<compile_context>
chip_gen: v7x
topology: tpu7x:2x2x1
jax: 0.10.0
libtpu: 0.0.40
codegen_flags: <defaults>
</compile_context>

<pallas_src>
import functools

import jax
import jax.numpy as jnp
from jax.experimental import pallas as pl
from jax.experimental.pallas import tpu as pltpu

_LANE = 128


def _round_up(x, m):
    return (x + m - 1) // m * m


@functools.lru_cache(maxsize=None)
def _make_vf_kernel(use_x, use_t, add_z):
    """Kernel factory; static config (which ODENet args exist, Euler fusion)
    is baked in.  delta_t is NOT baked in (folded into W2/b2 + the scalar)."""

    def kernel(*refs):
        refs = list(refs)
        t_sm = refs.pop(0) if use_t else None        # SMEM scalar: t*delta_t
        z_ref = refs.pop(0)
        x_ref = refs.pop(0) if use_x else None
        times_ref = refs.pop(0) if use_t else None
        w1z_ref = refs.pop(0)
        w1x_ref = refs.pop(0) if use_x else None
        w1t_ref = refs.pop(0) if use_t else None
        b1_ref, w2_ref, b2_ref, out_ref = refs

        cdt = w1z_ref.dtype
        z = z_ref[...]                                # native f32 state
        # First-layer pre-activation: z@W1z (+ x@W1x) (+ t_*w1t) + b1.
        pre = jnp.dot(z.astype(cdt), w1z_ref[...],
                      preferred_element_type=jnp.float32)
        if use_x:
            pre = pre + jnp.dot(x_ref[...].astype(cdt), w1x_ref[...],
                                preferred_element_type=jnp.float32)
        if use_t:
            # t_ = times[:,0] + t*delta_t, computed in-kernel; the width-1 time
            # feature is a rank-1 VPU broadcast-MAC, not an MXU column.
            t_col = times_ref[...] + t_sm[0]          # (TB,1) f32
            pre = pre + t_col * w1t_ref[...]
        pre = pre + b1_ref[...]
        h = jnp.tanh(pre)                             # f32 on the EUP
        f = jnp.dot(h.astype(w2_ref.dtype), w2_ref[...],
                    preferred_element_type=jnp.float32) + b2_ref[...]
        if add_z:                                     # fused explicit Euler
            f = f + z.astype(jnp.float32)
        out_ref[...] = f                              # (TB, out_dim) f32 store

    return kernel


def prepare_vector_field_params(params, *, hidden_dim, input_dim, delta_t,
                                has_input_arg=True, has_t_arg=True,
                                compute_dtype=jnp.bfloat16):
    """Split W1 into [z | input | t] parts matching the ODENet's argument
    layout, zero-pad the MLP hidden (lane) dim to 128, fold delta_t into the
    second layer and keep the output width at the real out_dim.

    bf16 is safe on v5e as well: only MXU operands are bf16; tanh, biases and
    the rank-1 time term stay f32."""
    w1, b1, w2, b2 = params
    H, D = hidden_dim, input_dim
    w1 = jnp.asarray(w1, jnp.float32)
    b1 = jnp.reshape(jnp.asarray(b1, jnp.float32), (1, -1))
    w2 = jnp.asarray(w2, jnp.float32)
    b2 = jnp.reshape(jnp.asarray(b2, jnp.float32), (1, -1))

    hm, out_dim = w1.shape[1], w2.shape[1]
    hm_p = _round_up(hm, _LANE)

    def pad_cols(a, n):
        return jnp.pad(a, ((0, 0), (0, n - a.shape[1])))

    row = 0
    w1z = pad_cols(w1[row:row + H], hm_p).astype(compute_dtype); row += H
    w1x = None
    if has_input_arg:
        w1x = pad_cols(w1[row:row + D], hm_p).astype(compute_dtype); row += D
    w1t = None
    if has_t_arg:
        w1t = pad_cols(w1[row:row + 1], hm_p); row += 1           # f32 row
    assert row == w1.shape[0], "W1 rows do not match the [z|input|t] layout"

    b1p = pad_cols(b1, hm_p)                                       # (1,Hm_p) f32
    w2p = jnp.pad(w2 * jnp.float32(delta_t),                       # fold delta_t
                  ((0, hm_p - hm), (0, 0))).astype(compute_dtype)  # (Hm_p,out)
    b2p = b2 * jnp.float32(delta_t)                                # (1,out) f32
    return dict(w1z=w1z, w1x=w1x, w1t=w1t, b1=b1p, w2=w2p, b2=b2p,
                hidden_dim=H, input_dim=D, out_dim=out_dim,
                delta_t=float(delta_t), has_input_arg=bool(has_input_arg),
                has_t_arg=bool(has_t_arg), compute_dtype=compute_dtype)


def prepare_input(x_input, prepared):
    """Cast self.input to the MXU compute dtype ONCE per ODE solve."""
    return jnp.asarray(x_input, prepared["compute_dtype"])


def prepare_times(times):
    """Normalize self.times to an f32 (B,1) column once per ODE solve."""
    t = jnp.asarray(times, jnp.float32)
    if t.ndim == 2 and t.shape[1] == 1:
        return t
    if t.ndim == 2:
        return t[:, 0:1]
    return t.reshape(-1, 1)


def _choose_tiling(B, block_b):
    """Pick (tb, b_pad).  Prefers b_pad == B (no wrapper pad / slice copy) and
    >= 2 grid tiles so v7x can shard the batch across both TensorCores."""
    block_b = max(8, _round_up(block_b, 8))
    if B <= block_b:
        if B >= 16 and B % 16 == 0:
            return B // 2, B           # two sublane-aligned tiles, no padding
        return B, B                    # single full-extent block (always legal)
    return block_b, _round_up(B, block_b)


def vector_field_forward(t, z, prepared, *, times=None, x_input=None,
                         block_b=2048, euler_update=False):
    """JAX/Pallas equivalent of _VectorField.forward(t, z).

    Returns delta_t * ODENet(input, times[:,0] + t*delta_t, z); with
    euler_update=True returns z + that (fused explicit-Euler step, saving the
    driver's separate axpy HBM pass)."""
    B, H = z.shape
    use_x = prepared["has_input_arg"]
    use_t = prepared["has_t_arg"]
    cdt = prepared["compute_dtype"]
    out_dim = prepared["out_dim"]
    hm_p = prepared["b1"].shape[1]
    if euler_update:
        assert out_dim == H, "euler_update requires out_dim == hidden_dim"

    # --- per-sample operands (z stays in its native dtype; cast in-kernel) ---
    ops = [jnp.asarray(z)]
    if use_x:
        x = x_input if x_input.dtype == cdt else jnp.asarray(x_input, cdt)
        ops.append(x)
    if use_t:
        ops.append(prepare_times(times))

    # --- batch tiling (prefer no padding; >= 2 tiles for v7x megacore) -------
    tb, b_pad = _choose_tiling(B, block_b)
    if b_pad != B:
        ops = [jnp.pad(a, ((0, b_pad - B), (0, 0))) for a in ops]

    # --- specs: per-row tiles for activations, VMEM-resident weights ---------
    def row_spec(a):
        return pl.BlockSpec((tb, a.shape[1]), lambda i, *_: (i, 0))

    def res_spec(a):
        return pl.BlockSpec(a.shape, lambda i, *_: (0, 0))

    weights = [prepared["w1z"]]
    if use_x:
        weights.append(prepared["w1x"])
    if use_t:
        weights.append(prepared["w1t"])
    weights += [prepared["b1"], prepared["w2"], prepared["b2"]]

    in_specs = [row_spec(a) for a in ops] + [res_spec(w) for w in weights]

    # --- advisory cost estimate for XLA's scheduler --------------------------
    flops = 2 * b_pad * hm_p * (H + (prepared["input_dim"] if use_x else 0)
                                + out_dim)
    bytes_accessed = sum(int(a.size) * a.dtype.itemsize for a in ops + weights)
    bytes_accessed += b_pad * out_dim * 4
    cost = pl.CostEstimate(flops=int(flops), transcendentals=int(b_pad * hm_p),
                           bytes_accessed=int(bytes_accessed))

    call_args = []
    num_sp = 0
    if use_t:
        # Scalar ODE time, pre-scaled by delta_t, prefetched into SMEM.
        call_args.append((jnp.asarray(t, jnp.float32) *
                          jnp.float32(prepared["delta_t"])).reshape((1,)))
        num_sp = 1
    call_args += ops + weights

    out = pl.pallas_call(
        _make_vf_kernel(use_x, use_t, bool(euler_update)),
        out_shape=jax.ShapeDtypeStruct((b_pad, out_dim), jnp.float32),
        grid_spec=pltpu.PrefetchScalarGridSpec(
            num_scalar_prefetch=num_sp,
            grid=(b_pad // tb,),
            in_specs=in_specs,
            out_specs=pl.BlockSpec((tb, out_dim), lambda i, *_: (i, 0)),
        ),
        compiler_params=pltpu.CompilerParams(
            dimension_semantics=("parallel",),        # batch tiles across TCs
            vmem_limit_bytes=64 * 1024 * 1024),
        cost_estimate=cost,
    )(*call_args)
    # TODO(synk): when the solver driver donates z, add
    # input_output_aliases={num_sp: 0} for euler_update to reuse z's buffer.

    return out if b_pad == B else out[:B]


def _reference_forward(t, z, params, *, times, x_input, delta_t):
    """Pure-jnp f32 reference (correctness check)."""
    w1, b1, w2, b2 = params
    t = jnp.reshape(t, (1, 1))
    t_ = times[:, 0:1] + t * jnp.float32(delta_t)
    feat = jnp.concatenate([z, x_input, t_], axis=1)
    h = jnp.tanh(feat @ w1 + jnp.reshape(b1, (1, -1)))
    return (h @ w2 + jnp.reshape(b2, (1, -1))) * jnp.float32(delta_t)


if __name__ == "__main__":
    B, H, D_IN, H_MLP = 8, 32, 4, 64
    DELTA_T = 0.1

    key = jax.random.PRNGKey(0)
    kz, kx, kt, kw1, kb1, kw2, kb2 = jax.random.split(key, 7)

    # Inputs / stored state of _VectorField
    z = jax.random.normal(kz, (B, H), dtype=jnp.float32)           # hidden state
    x_input = jax.random.normal(kx, (B, D_IN), dtype=jnp.float32)  # self.input
    times = jax.random.uniform(kt, (B, 1), dtype=jnp.float32)      # self.times
    t = jnp.array([0.5], dtype=jnp.float32)                        # solver time

    # Deterministic synthetic ODENet parameters
    feat_dim = H + D_IN + 1  # [z | input | t_]
    w1 = 0.1 * jax.random.normal(kw1, (feat_dim, H_MLP), dtype=jnp.float32)
    b1 = 0.1 * jax.random.normal(kb1, (1, H_MLP), dtype=jnp.float32)
    w2 = 0.1 * jax.random.normal(kw2, (H_MLP, H), dtype=jnp.float32)
    b2 = 0.1 * jax.random.normal(kb2, (1, H), dtype=jnp.float32)
    params = (w1, b1, w2, b2)

    ref = _reference_forward(t, z, params, times=times, x_input=x_input,
                             delta_t=DELTA_T)

    # f32 compute path: matches the reference tightly
    prep_f32 = prepare_vector_field_params(
        params, hidden_dim=H, input_dim=D_IN, delta_t=DELTA_T,
        has_input_arg=True, has_t_arg=True, compute_dtype=jnp.float32)
    x_f32 = prepare_input(x_input, prep_f32)                 # once per solve
    out_f32 = jax.block_until_ready(
        vector_field_forward(t, z, prep_f32, times=times, x_input=x_f32))
    assert out_f32.shape == (B, H)
    assert jnp.allclose(out_f32, ref, rtol=1e-4, atol=1e-5), "f32 mismatch"

    # bf16 MXU fast path (all generations): looser tolerance vs f32 reference
    prep_bf16 = prepare_vector_field_params(
        params, hidden_dim=H, input_dim=D_IN, delta_t=DELTA_T,
        has_input_arg=True, has_t_arg=True, compute_dtype=jnp.bfloat16)
    x_bf16 = prepare_input(x_input, prep_bf16)               # once per solve
    out_bf16 = jax.block_until_ready(
        vector_field_forward(t, z, prep_bf16, times=times, x_input=x_bf16))
    assert out_bf16.shape == (B, H)
    assert jnp.allclose(out_bf16, ref, rtol=5e-2, atol=1e-2), "bf16 mismatch"

    # Fused explicit-Euler step: z_{n+1} = z_n + delta_t * f(z_n)
    z_next = jax.block_until_ready(
        vector_field_forward(t, z, prep_f32, times=times, x_input=x_f32,
                             euler_update=True))
    assert z_next.shape == (B, H)
    assert jnp.allclose(z_next, z + ref, rtol=1e-4, atol=1e-5), "euler mismatch"

    print("KERNEL_OK")
</pallas_src>

<mosaic_0001>
module attributes {stable_mosaic.version = 11 : i64} {
  func.func @kernel(%arg0: i32, %arg1: memref<1xf32, #tpu.memory_space<smem>>, %arg2: memref<8x32xf32, #tpu.memory_space<vmem>>, %arg3: memref<8x4xf32, #tpu.memory_space<vmem>>, %arg4: memref<8x1xf32, #tpu.memory_space<vmem>>, %arg5: memref<32x128xf32, #tpu.memory_space<vmem>>, %arg6: memref<4x128xf32, #tpu.memory_space<vmem>>, %arg7: memref<1x128xf32, #tpu.memory_space<vmem>>, %arg8: memref<1x128xf32, #tpu.memory_space<vmem>>, %arg9: memref<128x32xf32, #tpu.memory_space<vmem>>, %arg10: memref<1x32xf32, #tpu.memory_space<vmem>>, %arg11: memref<8x32xf32, #tpu.memory_space<vmem>>) attributes {dimension_semantics = [#tpu.dimension_semantics<parallel>], iteration_bounds = array<i64: 1>, scalar_prefetch = 1 : i64, scratch_operands = 0 : i64, tpu.core_type = #tpu.core_type<tc>, window_params = [{transform_indices = @transform_0, window_bounds = array<i64: 8, 32>}, {transform_indices = @transform_1, window_bounds = array<i64: 8, 4>}, {transform_indices = @transform_2, window_bounds = array<i64: 8, 1>}, {pipeline_mode = #tpu.pipeline_mode<synchronous>, transform_indices = @transform_3, window_bounds = array<i64: 32, 128>}, {pipeline_mode = #tpu.pipeline_mode<synchronous>, transform_indices = @transform_4, window_bounds = array<i64: 4, 128>}, {pipeline_mode = #tpu.pipeline_mode<synchronous>, transform_indices = @transform_5, window_bounds = array<i64: 1, 128>}, {pipeline_mode = #tpu.pipeline_mode<synchronous>, transform_indices = @transform_6, window_bounds = array<i64: 1, 128>}, {pipeline_mode = #tpu.pipeline_mode<synchronous>, transform_indices = @transform_7, window_bounds = array<i64: 128, 32>}, {pipeline_mode = #tpu.pipeline_mode<synchronous>, transform_indices = @transform_8, window_bounds = array<i64: 1, 32>}, {transform_indices = @transform_9, window_bounds = array<i64: 8, 32>}]} {
    %c0 = arith.constant 0 : index
    %c0_0 = arith.constant 0 : index
    %0 = vector.load %arg2[%c0, %c0_0] : memref<8x32xf32, #tpu.memory_space<vmem>>, vector<8x32xf32>
    %c0_1 = arith.constant 0 : index
    %c0_2 = arith.constant 0 : index
    %1 = vector.load %arg5[%c0_1, %c0_2] : memref<32x128xf32, #tpu.memory_space<vmem>>, vector<32x128xf32>
    %cst = arith.constant dense<0.000000e+00> : vector<8x128xf32>
    %2 = tpu.matmul %0, %1, %cst {dimension_numbers = #tpu.dot_dimension_numbers<[1], [0], [0], [1], [0, 0, 1, 1], [], []>} : vector<8x32xf32>, vector<32x128xf32>, vector<8x128xf32> -> vector<8x128xf32>
    %c0_3 = arith.constant 0 : index
    %c0_4 = arith.constant 0 : index
    %3 = vector.load %arg3[%c0_3, %c0_4] : memref<8x4xf32, #tpu.memory_space<vmem>>, vector<8x4xf32>
    %c0_5 = arith.constant 0 : index
    %c0_6 = arith.constant 0 : index
    %4 = vector.load %arg6[%c0_5, %c0_6] : memref<4x128xf32, #tpu.memory_space<vmem>>, vector<4x128xf32>
    %cst_7 = arith.constant dense<0.000000e+00> : vector<8x128xf32>
    %5 = tpu.matmul %3, %4, %cst_7 {dimension_numbers = #tpu.dot_dimension_numbers<[1], [0], [0], [1], [0, 0, 1, 1], [], []>} : vector<8x4xf32>, vector<4x128xf32>, vector<8x128xf32> -> vector<8x128xf32>
    %6 = arith.addf %2, %5 : vector<8x128xf32>
    %c0_8 = arith.constant 0 : index
    %c0_9 = arith.constant 0 : index
    %7 = vector.load %arg4[%c0_8, %c0_9] : memref<8x1xf32, #tpu.memory_space<vmem>>, vector<8x1xf32>
    %c0_10 = arith.constant 0 : index
    %8 = memref.load %arg1[%c0_10] : memref<1xf32, #tpu.memory_space<smem>>
    %9 = vector.broadcast %8 : f32 to vector<8x1xf32>
    %10 = arith.addf %7, %9 : vector<8x1xf32>
    %c0_11 = arith.constant 0 : index
    %c0_12 = arith.constant 0 : index
    %11 = vector.load %arg7[%c0_11, %c0_12] : memref<1x128xf32, #tpu.memory_space<vmem>>, vector<1x128xf32>
    %12 = vector.broadcast %10 : vector<8x1xf32> to vector<8x128xf32>
    %13 = vector.broadcast %11 : vector<1x128xf32> to vector<8x128xf32>
    %14 = arith.mulf %12, %13 : vector<8x128xf32>
    %15 = arith.addf %6, %14 : vector<8x128xf32>
    %c0_13 = arith.constant 0 : index
    %c0_14 = arith.constant 0 : index
    %16 = vector.load %arg8[%c0_13, %c0_14] : memref<1x128xf32, #tpu.memory_space<vmem>>, vector<1x128xf32>
    %17 = vector.broadcast %16 : vector<1x128xf32> to vector<8x128xf32>
    %18 = arith.addf %15, %17 : vector<8x128xf32>
    %19 = math.tanh %18 : vector<8x128xf32>
    %c0_15 = arith.constant 0 : index
    %c0_16 = arith.constant 0 : index
    %20 = vector.load %arg9[%c0_15, %c0_16] : memref<128x32xf32, #tpu.memory_space<vmem>>, vector<128x32xf32>
    %cst_17 = arith.constant dense<0.000000e+00> : vector<8x32xf32>
    %21 = tpu.matmul %19, %20, %cst_17 {dimension_numbers = #tpu.dot_dimension_numbers<[1], [0], [0], [1], [0, 0, 1, 1], [], []>} : vector<8x128xf32>, vector<128x32xf32>, vector<8x32xf32> -> vector<8x32xf32>
    %c0_18 = arith.constant 0 : index
    %c0_19 = arith.constant 0 : index
    %22 = vector.load %arg10[%c0_18, %c0_19] : memref<1x32xf32, #tpu.memory_space<vmem>>, vector<1x32xf32>
    %23 = vector.broadcast %22 : vector<1x32xf32> to vector<8x32xf32>
    %24 = arith.addf %21, %23 : vector<8x32xf32>
    %c0_20 = arith.constant 0 : index
    %c0_21 = arith.constant 0 : index
    %25 = vector.load %arg11[%c0_20, %c0_21] : memref<8x32xf32, #tpu.memory_space<vmem>>, vector<8x32xf32>
    tpu.vector_store %arg11[%c0_20, %c0_21], %24 {strides = array<i32>} : memref<8x32xf32, #tpu.memory_space<vmem>>, vector<8x32xf32>,
    return
  }
  func.func @transform_0(%arg0: i32, %arg1: memref<1xf32, #tpu.memory_space<smem>>) -> (i32, i32) {
    %c0_i32 = arith.constant 0 : i32
    %c0_i32_0 = arith.constant 0 : i32
    return %arg0, %c0_i32 : i32, i32
  }
  func.func @transform_1(%arg0: i32, %arg1: memref<1xf32, #tpu.memory_space<smem>>) -> (i32, i32) {
    %c0_i32 = arith.constant 0 : i32
    %c0_i32_0 = arith.constant 0 : i32
    return %arg0, %c0_i32 : i32, i32
  }
  func.func @transform_2(%arg0: i32, %arg1: memref<1xf32, #tpu.memory_space<smem>>) -> (i32, i32) {
    %c0_i32 = arith.constant 0 : i32
    %c0_i32_0 = arith.constant 0 : i32
    return %arg0, %c0_i32 : i32, i32
  }
  func.func @transform_3(%arg0: i32, %arg1: memref<1xf32, #tpu.memory_space<smem>>) -> (i32, i32) {
    %c0_i32 = arith.constant 0 : i32
    %c0_i32_0 = arith.constant 0 : i32
    %c0_i32_1 = arith.constant 0 : i32
    return %c0_i32, %c0_i32_0 : i32, i32
  }
  func.func @transform_4(%arg0: i32, %arg1: memref<1xf32, #tpu.memory_space<smem>>) -> (i32, i32) {
    %c0_i32 = arith.constant 0 : i32
    %c0_i32_0 = arith.constant 0 : i32
    %c0_i32_1 = arith.constant 0 : i32
    return %c0_i32, %c0_i32_0 : i32, i32
  }
  func.func @transform_5(%arg0: i32, %arg1: memref<1xf32, #tpu.memory_space<smem>>) -> (i32, i32) {
    %c0_i32 = arith.constant 0 : i32
    %c0_i32_0 = arith.constant 0 : i32
    %c0_i32_1 = arith.constant 0 : i32
    return %c0_i32, %c0_i32_0 : i32, i32
  }
  func.func @transform_6(%arg0: i32, %arg1: memref<1xf32, #tpu.memory_space<smem>>) -> (i32, i32) {
    %c0_i32 = arith.constant 0 : i32
    %c0_i32_0 = arith.constant 0 : i32
    %c0_i32_1 = arith.constant 0 : i32
    return %c0_i32, %c0_i32_0 : i32, i32
  }
  func.func @transform_7(%arg0: i32, %arg1: memref<1xf32, #tpu.memory_space<smem>>) -> (i32, i32) {
    %c0_i32 = arith.constant 0 : i32
    %c0_i32_0 = arith.constant 0 : i32
    %c0_i32_1 = arith.constant 0 : i32
    return %c0_i32, %c0_i32_0 : i32, i32
  }
  func.func @transform_8(%arg0: i32, %arg1: memref<1xf32, #tpu.memory_space<smem>>) -> (i32, i32) {
    %c0_i32 = arith.constant 0 : i32
    %c0_i32_0 = arith.constant 0 : i32
    %c0_i32_1 = arith.constant 0 : i32
    return %c0_i32, %c0_i32_0 : i32, i32
  }
  func.func @transform_9(%arg0: i32, %arg1: memref<1xf32, #tpu.memory_space<smem>>) -> (i32, i32) {
    %c0_i32 = arith.constant 0 : i32
    %c0_i32_0 = arith.constant 0 : i32
    return %arg0, %c0_i32 : i32, i32
  }
}

</mosaic_0001>

<bundles_post_ra>
// kernel: tpu_custom_call.1
= control target key start
LH: loop header
LB: loop body
LE: loop exit
PB: predicated region body
PF: predicated region fallthrough
CT: control target
= control target key end

     0   :  { %16 = vsyncpa [#allocation5], 0  ;;  %s1033_s0 = inlined_call_operand.<no memory space> [shape: f32[1], index: 0, kind: input, shape index: {}]   ;;  %s1034_s1 = inlined_call_operand.hbm [shape: f32[8,32], index: 1, kind: input, shape index: {}]   ;;  %s1035_s2 = inlined_call_operand.hbm [shape: f32[8,4], index: 2, kind: input, shape index: {}]   ;;  %s1036_s3 = inlined_call_operand.hbm [shape: f32[8,1], index: 3, kind: input, shape index: {}]   ;;  %s1037_s4 = inlined_call_operand.hbm [shape: f32[32,128], index: 4, kind: input, shape index: {}]   ;;  %s1038_s5 = inlined_call_operand.hbm [shape: f32[4,128], index: 5, kind: input, shape index: {}]   ;;  %s1039_s6 = inlined_call_operand.hbm [shape: f32[1,128], index: 6, kind: input, shape index: {}]   ;;  %s1040_s7 = inlined_call_operand.hbm [shape: f32[1,128], index: 7, kind: input, shape index: {}]   ;;  %s1041_s8 = inlined_call_operand.hbm [shape: f32[128,32], index: 8, kind: input, shape index: {}]   ;;  %s1042_s9 = inlined_call_operand.hbm [shape: f32[1,32], index: 9, kind: input, shape index: {}]   ;;  %s1043_s10 = inlined_call_operand.hbm [shape: f32[8,32], index: 10, kind: output, shape index: {}]  }
   0x1   :  { %17 = vsyncpa [#allocation8], 0 }
   0x2   :  { %18 = vsyncpa [#allocation11], 0 }
   0x3   :  { %19 = vsyncpa [#allocation14], 0 }
   0x4   :  { %20 = vsyncpa [#allocation17], 0 }
   0x5   :  { %21 = vsyncpa [#allocation6], 0  ;;  %s804_s13 = smov [#allocation7]   ;;  %s805_s15 = smov [#allocation10]  }
   0x6   :  { %s38_s14 = sshll.u32 %s804_s13, 4  ;;  %s57_s16 = sshll.u32 %s805_s15, 4  ;;  %s39_s14 = int_to_ptr.vmem [resolvable:$true] %s38_s14  ;;  %s875_s16 = int_to_ptr.vmem [resolvable:$true] %s57_s16 }
   0x7   :  { %s572_s19 = scalar_lea.hbm %s1035_s2, 128 }
   0x8   :  { %p573_p0 = scmp.ne.s32.totalorder %s1035_s2, %s572_s19  ;;  %p576_p1 = scmp.lt.u32.totalorder %s572_s19, %s1035_s2 }
   0xa   :  { %p578_p2 = pnand %p576_p1, %p573_p0 }
   0xc   :  { %581 = shalt.err (!%p578_p2)
}
   0xd   :  { %s582_s24 = scalar_lea.vmem %s39_s14, 128  ;;  %p587_p4 = scmp.lt.s32.totalorder %s39_s14, %s39_s14 }
   0xe   :  { %p583_p3 = scmp.ne.s32.totalorder %s39_s14, %s582_s24  ;;  %p588_p5 = scmp.lt.s32.totalorder %s582_s24, %s582_s24 }
  0x10   :  { %p589_p6 = por %p588_p5, %p587_p4 }
  0x12   :  { %p590_p7 = pnand %p589_p6, %p583_p3 }
  0x14   :  { %593 = shalt.err (!%p590_p7)
}
  0x15   :  { %41 = dma.hbm_to_vmem [thread:$0]  %s1035_s2, 128, %s39_s14, [#allocation8]  }
  0x16   :  { %s594_s29 = scalar_lea.hbm %s1037_s4, 512 }
  0x17   :  { %p595_p8 = scmp.ne.s32.totalorder %s1037_s4, %s594_s29  ;;  %p598_p9 = scmp.lt.u32.totalorder %s594_s29, %s1037_s4 }
  0x19   :  { %p600_p10 = pnand %p598_p9, %p595_p8 }
  0x1b   :  { %603 = shalt.err (!%p600_p10)
}
  0x1c   :  { %s604_s15 = scalar_lea.vmem %s875_s16, 512  ;;  %p609_p12 = scmp.lt.s32.totalorder %s875_s16, %s875_s16 }
  0x1d   :  { %p605_p11 = scmp.ne.s32.totalorder %s875_s16, %s604_s15  ;;  %p610_p13 = scmp.lt.s32.totalorder %s604_s15, %s604_s15 }
  0x1f   :  { %p611_p0 = por %p610_p13, %p609_p12 }
  0x21   :  { %p612_p1 = pnand %p611_p0, %p605_p11 }
  0x23   :  { %615 = shalt.err (!%p612_p1)
}
  0x24   :  { %s806_s2 = smov 128   ;;  %s807_s14 = smov 8  }
  0x25   :  { %63 = dma.hbm_to_vmem [thread:$0]  %s1037_s4, 512, %s875_s16, [#allocation11], %s806_s2, %s806_s2, %s807_s14  }
  0x26   :  { %s808_s19 = smov [#allocation13]   ;;  %s809_s21 = smov [#allocation16]  }
  0x27   :  { %s80_s20 = sshll.u32 %s808_s19, 4  ;;  %s99_s22 = sshll.u32 %s809_s21, 4  ;;  %s81_s20 = int_to_ptr.vmem [resolvable:$true] %s80_s20  ;;  %s909_s22 = int_to_ptr.vmem [resolvable:$true] %s99_s22 }
  0x28   :  { %s616_s25 = scalar_lea.hbm %s1039_s6, 16 }
  0x29   :  { %p617_p2 = scmp.ne.s32.totalorder %s1039_s6, %s616_s25  ;;  %p620_p3 = scmp.lt.u32.totalorder %s616_s25, %s1039_s6 }
  0x2b   :  { %p622_p4 = pnand %p620_p3, %p617_p2 }
  0x2d   :  { %625 = shalt.err (!%p622_p4)
}
  0x2e   :  { %s626_s4 = scalar_lea.vmem %s81_s20, 16  ;;  %s630_s16 = scalar_lea.vmem %s81_s20, 32 }
  0x2f   :  { %p627_p5 = scmp.ne.s32.totalorder %s81_s20, %s626_s4  ;;  %p631_p6 = scmp.lt.s32.totalorder %s81_s20, %s81_s20 }
  0x30   :  { %p632_p7 = scmp.lt.s32.totalorder %s630_s16, %s626_s4 }
  0x32   :  { %p633_p8 = por %p632_p7, %p631_p6 }
  0x34   :  { %p634_p9 = pnand %p633_p8, %p627_p5 }
  0x36   :  { %637 = shalt.err (!%p634_p9)
}
  0x37   :  { %83 = dma.hbm_to_vmem [thread:$0]  %s1039_s6, 16, %s81_s20, [#allocation14]  }
  0x38   :  { %s638_s15 = scalar_lea.hbm %s1041_s8, 2048 }
  0x39   :  { %p639_p10 = scmp.ne.s32.totalorder %s1041_s8, %s638_s15  ;;  %p642_p11 = scmp.lt.u32.totalorder %s638_s15, %s1041_s8 }
  0x3b   :  { %p644_p12 = pnand %p642_p11, %p639_p10 }
  0x3d   :  { %647 = shalt.err (!%p644_p12)
}
  0x3e   :  { %s648_s23 = scalar_lea.vmem %s909_s22, 2048  ;;  %p653_p0 = scmp.lt.s32.totalorder %s909_s22, %s909_s22 }
  0x3f   :  { %p649_p13 = scmp.ne.s32.totalorder %s909_s22, %s648_s23  ;;  %p654_p1 = scmp.lt.s32.totalorder %s648_s23, %s648_s23 }
  0x41   :  { %p655_p2 = por %p654_p1, %p653_p0 }
  0x43   :  { %p656_p3 = pnand %p655_p2, %p649_p13 }
  0x45   :  { %659 = shalt.err (!%p656_p3)
}
  0x46   :  { %105 = dma.hbm_to_vmem [thread:$0]  %s1041_s8, 2048, %s909_s22, [#allocation17], %s806_s2, %s806_s2, %s807_s14  }
  0x47   :  { %s810_s24 = smov [#allocation4]   ;;  %s811_s26 = smov [#allocation9]  }
  0x48   :  { %s28_s25 = sshll.u32 %s810_s24, 4  ;;  %s48_s27 = sshll.u32 %s811_s26, 4  ;;  %s29_s25 = int_to_ptr.vmem [resolvable:$true] %s28_s25  ;;  %s49_s27 = int_to_ptr.vmem [resolvable:$true] %s48_s27 }
  0x49   :  { %s660_s4 = scalar_lea.hbm %s1034_s1, 128 }
  0x4a   :  { %p661_p4 = scmp.ne.s32.totalorder %s1034_s1, %s660_s4  ;;  %p664_p5 = scmp.lt.u32.totalorder %s660_s4, %s1034_s1 }
  0x4c   :  { %p666_p6 = pnand %p664_p5, %p661_p4 }
  0x4e   :  { %669 = shalt.err (!%p666_p6)
}
  0x4f   :  { %s670_s8 = scalar_lea.vmem %s29_s25, 128  ;;  %p675_p8 = scmp.lt.s32.totalorder %s29_s25, %s29_s25 }
  0x50   :  { %p671_p7 = scmp.ne.s32.totalorder %s29_s25, %s670_s8  ;;  %p676_p9 = scmp.lt.s32.totalorder %s670_s8, %s670_s8 }
  0x52   :  { %p677_p10 = por %p676_p9, %p675_p8 }
  0x54   :  { %p678_p11 = pnand %p677_p10, %p671_p7 }
  0x56   :  { %681 = shalt.err (!%p678_p11)
}
  0x57   :  { %31 = dma.hbm_to_vmem [thread:$0]  %s1034_s1, 128, %s29_s25, [#allocation5]  }
  0x58   :  { %s682_s15 = scalar_lea.hbm %s1036_s3, 128 }
  0x59   :  { %p683_p12 = scmp.ne.s32.totalorder %s1036_s3, %s682_s15  ;;  %p686_p13 = scmp.lt.u32.totalorder %s682_s15, %s1036_s3 }
  0x5b   :  { %p688_p0 = pnand %p686_p13, %p683_p12 }
  0x5d   :  { %691 = shalt.err (!%p688_p0)
}
  0x5e   :  { %s692_s23 = scalar_lea.vmem %s49_s27, 128  ;;  %p697_p2 = scmp.lt.s32.totalorder %s49_s27, %s49_s27 }
  0x5f   :  { %p693_p1 = scmp.ne.s32.totalorder %s49_s27, %s692_s23  ;;  %p698_p3 = scmp.lt.s32.totalorder %s692_s23, %s692_s23 }
  0x61   :  { %p699_p4 = por %p698_p3, %p697_p2 }
  0x63   :  { %p700_p5 = pnand %p699_p4, %p693_p1 }
  0x65   :  { %703 = shalt.err (!%p700_p5)
}
  0x66   :  { %51 = dma.hbm_to_vmem [thread:$0]  %s1036_s3, 128, %s49_s27, [#allocation8]  }
  0x67   :  { %s812_s20 = smov [#allocation12]   ;;  %s813_s25 = smov [#allocation15]  }
  0x68   :  { %s70_s24 = sshll.u32 %s812_s20, 4  ;;  %s90_s26 = sshll.u32 %s813_s25, 4  ;;  %s71_s24 = int_to_ptr.vmem [resolvable:$true] %s70_s24  ;;  %s91_s26 = int_to_ptr.vmem [resolvable:$true] %s90_s26 }
  0x69   :  { %s704_s4 = scalar_lea.hbm %s1038_s5, 64 }
  0x6a   :  { %p705_p6 = scmp.ne.s32.totalorder %s1038_s5, %s704_s4  ;;  %p708_p7 = scmp.lt.u32.totalorder %s704_s4, %s1038_s5 }
  0x6c   :  { %p710_p8 = pnand %p708_p7, %p705_p6 }
  0x6e   :  { %713 = shalt.err (!%p710_p8)
}
  0x6f   :  { %s714_s3 = scalar_lea.vmem %s71_s24, 64  ;;  %p719_p10 = scmp.lt.s32.totalorder %s71_s24, %s71_s24 }
  0x70   :  { %p715_p9 = scmp.ne.s32.totalorder %s71_s24, %s714_s3  ;;  %p720_p11 = scmp.lt.s32.totalorder %s714_s3, %s714_s3 }
  0x72   :  { %p721_p12 = por %p720_p11, %p719_p10 }
  0x74   :  { %p722_p13 = pnand %p721_p12, %p715_p9 }
  0x76   :  { %725 = shalt.err (!%p722_p13)
}
  0x77   :  { %73 = dma.hbm_to_vmem [thread:$0]  %s1038_s5, 64, %s71_s24, [#allocation11]  }
  0x78   :  { %s726_s22 = scalar_lea.hbm %s1040_s7, 16 }
  0x79   :  { %p727_p0 = scmp.ne.s32.totalorder %s1040_s7, %s726_s22  ;;  %p730_p1 = scmp.lt.u32.totalorder %s726_s22, %s1040_s7 }
  0x7b   :  { %p732_p2 = pnand %p730_p1, %p727_p0 }
  0x7d   :  { %735 = shalt.err (!%p732_p2)
}
  0x7e   :  { %s736_s19 = scalar_lea.vmem %s91_s26, 16  ;;  %s740_s21 = scalar_lea.vmem %s91_s26, 32 }
  0x7f   :  { %p737_p3 = scmp.ne.s32.totalorder %s91_s26, %s736_s19  ;;  %p741_p4 = scmp.lt.s32.totalorder %s91_s26, %s91_s26 }
  0x80   :  { %p742_p5 = scmp.lt.s32.totalorder %s740_s21, %s736_s19 }
  0x82   :  { %p743_p6 = por %p742_p5, %p741_p4 }
  0x84   :  { %p744_p7 = pnand %p743_p6, %p737_p3 }
  0x86   :  { %747 = shalt.err (!%p744_p7)
}
  0x87   :  { %93 = dma.hbm_to_vmem [thread:$0]  %s1040_s7, 16, %s91_s26, [#allocation14]  }
  0x88   :  { %s814_s1 = smov [#allocation18]   ;;  %s748_s25 = scalar_lea.hbm %s1042_s9, 16 }
  0x89   :  { %s112_s6 = sshll.u32 %s814_s1, 4  ;;  %p749_p8 = scmp.ne.s32.totalorder %s1042_s9, %s748_s25  ;;  %s113_s6 = int_to_ptr.vmem [resolvable:$true] %s112_s6 }
  0x8a   :  { %p752_p9 = scmp.lt.u32.totalorder %s748_s25, %s1042_s9 }
  0x8c   :  { %p754_p10 = pnand %p752_p9, %p749_p8 }
  0x8e   :  { %757 = shalt.err (!%p754_p10)
}
  0x8f   :  { %s758_s30 = scalar_lea.vmem %s113_s6, 16  ;;  %s762_s7 = scalar_lea.vmem %s113_s6, 32 }
  0x90   :  { %p759_p11 = scmp.ne.s32.totalorder %s113_s6, %s758_s30  ;;  %p763_p12 = scmp.lt.s32.totalorder %s113_s6, %s113_s6 }
  0x91   :  { %p764_p13 = scmp.lt.s32.totalorder %s762_s7, %s758_s30 }
  0x93   :  { %p765_p0 = por %p764_p13, %p763_p12 }
  0x95   :  { %p766_p1 = pnand %p765_p0, %p759_p11 }
  0x97   :  { %769 = shalt.err (!%p766_p1)
}
  0x98   :  { %115 = dma.hbm_to_vmem [thread:$0]  %s1042_s9, 16, %s113_s6, [#allocation17]  }
  0x99   :  { %792 = dma.done.wait [#allocation5], 128  }
  0x9a   :  { %793 = vsyncadd [#allocation5], 4294967168 }
  0x9b   :  { %794 = dma.done.wait [#allocation8], 256  }
  0x9c   :  { %795 = vsyncadd [#allocation8], 4294967040 }
  0x9d   :  { %796 = dma.done.wait [#allocation11], 576  }
  0x9e   :  { %797 = vsyncadd [#allocation11], 4294966720 }
  0x9f   :  { %798 = dma.done.wait [#allocation14], 32  }
  0xa0   :  { %799 = vsyncadd [#allocation14], 4294967264 }
  0xa1   :  { %800 = dma.done.wait [#allocation17], 2064  }
  0xa2   :  { %801 = vsyncadd [#allocation17], 4294965232  ;;  %v815_v0 = vmov 0.0   ;;  %vm816_vm0 = vmmov 0   ;;  %v817_v1 = vmov 0   ;;  %v818_v2 = vmov 0.0|0.0  }
  0xa3   :  { %472 = vmatprep.subr.mxu1 %v815_v0  ;;  %474 = vmatprep.mubr.msk.f32.mxu1 %vm816_vm0, %v815_v0  ;;  %vm154_vm1 = vcmask 1043456   ;;  %vm150_vm2 = vcmask 31744   ;;  %v149_v3 = vld [vmem:[#allocation12] sm:$0xf]  ;;  %v148_v4 = vld [vmem:[#allocation7] sm:$0xff]  ;;  %v304_v6 = vstv %s1033_s0  ;;  %v145_v7 = vld [vmem:[#allocation10 + $0x8] sm:$0xff] }
  0xa4   :  { %569 = vset.pattern.permute.xlu0 %v817_v1  ;;  %529 = vmatprep.subr.bf16.mxu0 %v818_v2  ;;  %v144_v5 = vld [vmem:[#allocation10] sm:$0xff]  ;;  %v146_v8 = vld [vmem:[#allocation10 + $0x10] sm:$0xff]  ;;  %v147_v9 = vld [vmem:[#allocation10 + $0x18] sm:$0xff]  ;;  %vm228_vm3 = vcmask 261120   ;;  %s819_s0 = smov [#allocation19]  }
  0xa5   :  { %520 = vmatprep.mubr.msk.f32.mxu0 %vm816_vm0, %v815_v0  ;;  %473 = vmatpush3.msk.msra.mxu1 %vm154_vm1, %v149_v3  ;;  %v524_v10 = vpack.c.bf16 %v145_v7, %v144_v5  ;;  %v302_v11 = vld [vmem:[#allocation9] sm:$0xff]  ;;  %v329_v12 = vld [vmem:[#allocation16] sm:$0xff]  ;;  %v330_v14 = vld [vmem:[#allocation16 + $0x8] sm:$0xff]  ;;  %v527_v17 = vpack.c.bf16 %v147_v9, %v146_v8  ;;  %s429_s3 = sshll.u32 %s819_s0, 4  ;;  %s430_s3 = int_to_ptr.vmem [resolvable:$true] %s429_s3 }
  0xa6   :  { %475 = vmatmul.mubr.msk.f32.vlgmr.msra.gmra.mrb[0].mxu1 %vm150_vm2, %v148_v4  ;;  %523 = vmatprep.subr.bf16.mxu1 %v818_v2  ;;  %v305_v13 = vadd.f32 %v304_v6, %v302_v11  ;;  %v331_v15 = vld [vmem:[#allocation16 + $0x10] sm:$0xff]  ;;  %v332_v16 = vld [vmem:[#allocation16 + $0x18] sm:$0xff]  ;;  %v530_v18 = vpack.c.bf16 %v330_v14, %v329_v12  ;;  %v143_v20 = vld [vmem:[#allocation4] sm:$0xff]  ;;  %s770_s27 = scalar_lea.vmem %s430_s3, 128  ;;  %p775_p3 = scmp.lt.s32.totalorder %s430_s3, %s430_s3 }
  0xa7   :  { %485 = vmatprep.mubr.msk.f32.mxu1 %vm816_vm0, %v815_v0  ;;  %525 = vmatpush3.bf16.msra.mxu1 %v524_v10  ;;  %v533_v19 = vpack.c.bf16 %v332_v16, %v331_v15  ;;  %v333_v21 = vld [vmem:[#allocation16 + $0x20] sm:$0xff]  ;;  %v334_v22 = vld [vmem:[#allocation16 + $0x28] sm:$0xff]  ;;  %v335_v23 = vld [vmem:[#allocation16 + $0x30] sm:$0xff]  ;;  %p771_p2 = scmp.ne.s32.totalorder %s430_s3, %s770_s27  ;;  %p776_p4 = scmp.lt.s32.totalorder %s770_s27, %s770_s27 }
  0xa8   :  { %526 = vmatprep.subr.bf16.mxu1 %v818_v2  ;;  %309 = vperm.xlu0 %569, %v305_v13   ;;  %v536_v24 = vpack.c.bf16 %v334_v22, %v333_v21  ;;  %v336_v25 = vld [vmem:[#allocation16 + $0x38] sm:$0xff]  ;;  %v337_v27 = vld [vmem:[#allocation16 + $0x40] sm:$0xff]  ;;  %v338_v28 = vld [vmem:[#allocation16 + $0x48] sm:$0xff] }
  0xa9   :  { %531 = vmatpush3.bf16.msra.mxu0 %v530_v18  ;;  %v539_v26 = vpack.c.bf16 %v336_v25, %v335_v23  ;;  %v542_v29 = vpack.c.bf16 %v338_v28, %v337_v27  ;;  %v339_v30 = vld [vmem:[#allocation16 + $0x50] sm:$0xff]  ;;  %v340_v31 = vld [vmem:[#allocation16 + $0x58] sm:$0xff]  ;;  %v341_v33 = vld [vmem:[#allocation16 + $0x60] sm:$0xff]  ;;  %p777_p5 = por %p776_p4, %p775_p3 }
  0xaa   :  { %532 = vmatprep.subr.bf16.mxu0 %v818_v2  ;;  %v545_v32 = vpack.c.bf16 %v340_v31, %v339_v30  ;;  %v342_v34 = vld [vmem:[#allocation16 + $0x68] sm:$0xff]  ;;  %v343_v36 = vld [vmem:[#allocation16 + $0x70] sm:$0xff]  ;;  %v344_v37 = vld [vmem:[#allocation16 + $0x78] sm:$0xff] }
  0xab   :  { %528 = vmatpush3.bf16.msra.mxu1 %v527_v17  ;;  %v548_v35 = vpack.c.bf16 %v342_v34, %v341_v33  ;;  %v551_v38 = vpack.c.bf16 %v344_v37, %v343_v36  ;;  %v445_v41 = vld [vmem:[#allocation13] ss:$0 sm:$0xff]  ;;  %v446_v47 = vld [vmem:[#allocation15] ss:$0 sm:$0xff]  ;;  %v447_v51 = vld [vmem:[#allocation18] ss:$0 sm:$0xff]  ;;  %p778_p6 = pnand %p777_p5, %p771_p2 }
  0xad   :  { %534 = vmatpush3.bf16.msra.mxu0 %v533_v19 }
  0xae   :  { %486 = vmatmul.mubr.msk.f32.vlgmr.msra.gmra.mrb[2].mxu1 %vm228_vm3, %v143_v20  ;;  %535 = vmatprep.subr.bf16.mxu0 %v818_v2 }
  0xb1   :  { %537 = vmatpush3.bf16.msra.mxu0 %v536_v24 }
  0xb2   :  { %538 = vmatprep.subr.bf16.mxu0 %v818_v2 }
  0xb5   :  { %540 = vmatpush3.bf16.msra.mxu0 %v539_v26 }
  0xb6   :  { %541 = vmatprep.subr.bf16.mxu0 %v818_v2 }
  0xb9   :  { %543 = vmatpush3.bf16.msra.mxu0 %v542_v29 }
  0xba   :  { %544 = vmatprep.subr.bf16.mxu0 %v818_v2 }
  0xbd   :  { %546 = vmatpush3.bf16.msra.mxu0 %v545_v32 }
  0xbe   :  { %547 = vmatprep.subr.bf16.mxu0 %v818_v2 }
  0xc1   :  { %549 = vmatpush3.bf16.msra.mxu0 %v548_v35 }
  0xc2   :  { %550 = vmatprep.subr.bf16.mxu0 %v818_v2 }
  0xc5   :  { %552 = vmatpush3.bf16.msra.mxu0 %v551_v38 }
 0x127   :  { %v310_v42 = vpop.permute.xlu0 %309 }
 0x128   :  { %v318_v43 = vmul.f32 %v445_v41, %v310_v42 }
 0x179   :  { %v224_v39 = vpop.f32.mrb[0].mxu1 }
 0x17a   :  { %v476_v40 = vpop.f32.mrb[1].mxu1 }
 0x181   :  { %v298_v44 = vpop.f32.mrb[2].mxu1 }
 0x182   :  { %v299_v45 = vadd.f32 %v298_v44, %v224_v39  ;;  %v487_v46 = vpop.f32.mrb[3].mxu1 }
 0x184   :  { %v319_v48 = vadd.f32 %v318_v43, %v299_v45 }
 0x186   :  { %v327_v49 = vadd.f32 %v446_v47, %v319_v48 }
 0x188   :  { %570 = vtanh.f32 %v327_v49 }
 0x192   :  { %v571_v50 = vpop.eup %570 }
 0x193   :  { %521 = vmatmul.mubr.f32.vlgmr.msra.gmra.mrb[0].mxu0 %v571_v50 }
 0x266   :  { %v418_v52 = vpop.f32.mrb[0].mxu0 }
 0x267   :  { %v419_v53 = vadd.f32 %v447_v51, %v418_v52  ;;  %v522_v54 = vpop.f32.mrb[1].mxu0 }
 0x269   :  { %422 = vst.msk [vmem:[#allocation19] sm:$0xff] %vm228_vm3, %v419_v53 }
 0x26a   :  { %781 = shalt.err (!%p778_p6)
}
 0x26b   :  { %s782_s14 = scalar_lea.hbm %s1043_s10, 128 }
 0x26c   :  { %p783_p7 = scmp.ne.s32.totalorder %s1043_s10, %s782_s14  ;;  %p786_p8 = scmp.lt.u32.totalorder %s782_s14, %s1043_s10 }
 0x26e   :  { %p788_p9 = pnand %p786_p8, %p783_p7 }
 0x270   :  { %791 = shalt.err (!%p788_p9)
}
 0x271   :  { %432 = dma.vmem_to_hbm [thread:$0]  %s430_s3, 128, %s1043_s10, [#allocation6]  }
 0x272   :  { %802 = dma.done.wait [#allocation6], 128  }
 0x273   :  { %803 = vsyncadd [#allocation6], 4294967168 }
 0x274   :  { %436 = vsyncpa [#allocation5], 1 }
 0x275   :  { %437 = vsyncpa [#allocation8], 1 }
 0x276   :  { %438 = vsyncpa [#allocation11], 1 }
 0x277   :  { %439 = vsyncpa [#allocation14], 1 }
 0x278   :  { %440 = vsyncpa [#allocation17], 1 }
 0x279   :  { %441 = vsyncpa [#allocation6], 1 }

</bundles_post_ra>
